<compile_context>
chip_gen: v6e
topology: v6e:2x2x1
jax: 0.10.0
libtpu: 0.0.40
codegen_flags: <defaults>
</compile_context>

<pallas_src>
import math

import jax
import jax.numpy as jnp
from jax.experimental import pallas as pl
from jax.experimental.pallas import tpu as pltpu


# ----------------------------------------------------------------------------
# Pallas kernel
# ----------------------------------------------------------------------------
def _make_hyper_kernel(n_extra_hidden):
    """One grid step == one fc group == a batch of clients sharing head weights.

    Trunk: 1 + n_extra_hidden (Linear + ReLU) layers, block-diagonalized so the
    flattened (n_pad, C_max*E) embedding batch goes through plain 2-D matmuls.
    Head : block-diagonal per-chunk Linear heads -> flat (n_pad, C_max*O).
    """

    def kernel(*refs):
        emb_ref = refs[0]                            # (n_pad, C_max*E)
        w1_ref, b1_ref = refs[1], refs[2]            # (C_max*E, C_max*H), (1, C_max*H)
        hidden_refs = refs[3:3 + 2 * n_extra_hidden]
        whead_ref = refs[3 + 2 * n_extra_hidden]     # (C_max*H, C_max*O)
        bhead_ref = refs[4 + 2 * n_extra_hidden]     # (1, C_max*O)
        out_ref = refs[5 + 2 * n_extra_hidden]       # (n_pad, C_max*O)

        h = jnp.dot(emb_ref[...], w1_ref[...], preferred_element_type=jnp.float32)
        h = jnp.maximum(h + b1_ref[...], 0.0)
        for li in range(n_extra_hidden):
            w = hidden_refs[2 * li][...]
            b = hidden_refs[2 * li + 1][...]
            h = jnp.dot(h, w, preferred_element_type=jnp.float32)
            h = jnp.maximum(h + b, 0.0)

        out = jnp.dot(h, whead_ref[...], preferred_element_type=jnp.float32)
        out_ref[...] = out + bhead_ref[...]

    return kernel


def hyper_forward_grouped_pallas(emb_all, trunk_params, whead_all, bhead_all):
    """Batched forward for ALL fc groups in one pallas_call.

    emb_all     : (G, n_pad, C_max*E)  flattened, zero-padded per-group client batches
    trunk_params: [w1_bd(CE,CH), b1_bd(1,CH), wh_bd(CH,CH), bh_bd(1,CH), ...]
    whead_all   : (G, C_max*H, C_max*O) block-diagonal head weights per group
    bhead_all   : (G, 1, C_max*O)       flat head biases per group
    returns (G, n_pad, C_max*O) float32
    """
    G, n_pad, CE = emb_all.shape
    _, CH = trunk_params[0].shape
    _, _, CO = whead_all.shape
    n_extra = (len(trunk_params) - 2) // 2

    in_specs = [
        # per-group client batch
        pl.BlockSpec((None, n_pad, CE), lambda g: (g, 0, 0)),
        # shared trunk weights: same block every step -> DMA'd into VMEM once
        pl.BlockSpec((CE, CH), lambda g: (0, 0)),
        pl.BlockSpec((1, CH), lambda g: (0, 0)),
    ]
    for _ in range(n_extra):
        in_specs.append(pl.BlockSpec((CH, CH), lambda g: (0, 0)))
        in_specs.append(pl.BlockSpec((1, CH), lambda g: (0, 0)))
    # per-group head block
    in_specs.append(pl.BlockSpec((None, CH, CO), lambda g: (g, 0, 0)))
    in_specs.append(pl.BlockSpec((None, 1, CO), lambda g: (g, 0, 0)))

    grid_spec = pltpu.PrefetchScalarGridSpec(
        num_scalar_prefetch=0,
        grid=(G,),
        in_specs=in_specs,
        out_specs=pl.BlockSpec((None, n_pad, CO), lambda g: (g, 0, 0)),
    )

    return pl.pallas_call(
        _make_hyper_kernel(n_extra),
        out_shape=jax.ShapeDtypeStruct((G, n_pad, CO), jnp.float32),
        grid_spec=grid_spec,
        compiler_params=pltpu.CompilerParams(
            dimension_semantics=("parallel",)),
    )(emb_all, *trunk_params, whead_all, bhead_all)


# ----------------------------------------------------------------------------
# Module-equivalent parameters + batched forward wrapper
# ----------------------------------------------------------------------------
def _block_diag(blocks):
    rows = sum(b.shape[0] for b in blocks)
    cols = sum(b.shape[1] for b in blocks)
    out = jnp.zeros((rows, cols), jnp.float32)
    r = c = 0
    for b in blocks:
        out = out.at[r:r + b.shape[0], c:c + b.shape[1]].set(b)
        r += b.shape[0]
        c += b.shape[1]
    return out


class HyperPallas:
    def __init__(self, clients_message, embedding_dim, hnet_output_size,
                 hidden_layers, hidm, norm_var=0.002, seed=0):
        self.clients_message = list(clients_message)
        self.hnet_output_size = int(hnet_output_size)
        O, E, H = self.hnet_output_size, int(embedding_dim), int(hidm)
        key = jax.random.PRNGKey(seed)

        # ---- raw parameters (mirror the torch module; Linear stored (in,out)) ----
        self.embeddings = []
        for p in self.clients_message:
            key, k = jax.random.split(key)
            c = math.ceil(p / O)
            self.embeddings.append(
                norm_var * jax.random.normal(k, (c, E), jnp.float32))

        key, kw, kb = jax.random.split(key, 3)
        self.w1 = 0.05 * jax.random.normal(kw, (E, H), jnp.float32)
        self.b1 = 0.05 * jax.random.normal(kb, (1, H), jnp.float32)
        self.hidden = []
        for _ in range(hidden_layers - 1):
            key, kw, kb = jax.random.split(key, 3)
            self.hidden.append(
                (0.05 * jax.random.normal(kw, (H, H), jnp.float32),
                 0.05 * jax.random.normal(kb, (1, H), jnp.float32)))

        result = [math.ceil(p / O) for p in self.clients_message]
        self.fc = []  # (fcw:(c,H,O), fcb:(c,O)) per unique chunk count, first-occurrence order
        for c in list(dict.fromkeys(result)):
            key, kw, kb = jax.random.split(key, 3)
            self.fc.append(
                (0.05 * jax.random.normal(kw, (c, H, O), jnp.float32),
                 0.05 * jax.random.normal(kb, (c, O), jnp.float32)))
        # NOTE: replicated verbatim from the reference module (fc built in
        # first-occurrence order, idx_to_fc from sorted order).
        fc_index = {value: index for index, value in enumerate(sorted(set(result)))}
        self.idx_to_fc = {idx: fc_index[value] for idx, value in enumerate(result)}

        # ---- group clients by fc group; pack per-group batches for the kernel ----
        N = len(self.clients_message)
        G = len(self.fc)
        C_max = max(result)
        self._C_max = C_max

        group_members = [[] for _ in range(G)]
        self._client_pos = []           # client idx -> (group g, row j within group)
        for idx in range(N):
            g = self.idx_to_fc[idx]
            self._client_pos.append((g, len(group_members[g])))
            group_members[g].append(idx)
        n_max = max(len(m) for m in group_members)
        n_pad = max(8, ((n_max + 7) // 8) * 8)    # sublane-friendly per-group batch

        emb_all = jnp.zeros((G, n_pad, C_max * E), jnp.float32)
        for g, members in enumerate(group_members):
            for j, idx in enumerate(members):
                e = self.embeddings[idx]
                emb_all = emb_all.at[g, j, : e.shape[0] * E].set(e.reshape(-1))
        self._emb_all = emb_all

        trunk = [_block_diag([self.w1] * C_max), jnp.tile(self.b1, (1, C_max))]
        for w, b in self.hidden:
            trunk.append(_block_diag([w] * C_max))
            trunk.append(jnp.tile(b, (1, C_max)))
        self._trunk = trunk

        wheads, bheads = [], []
        for fcw, fcb in self.fc:
            c = fcw.shape[0]
            blocks = [fcw[j] for j in range(c)]
            blocks += [jnp.zeros((H, O), jnp.float32)] * (C_max - c)
            wheads.append(_block_diag(blocks))
            bheads.append(jnp.concatenate(
                [fcb.reshape(-1),
                 jnp.zeros(((C_max - c) * O,), jnp.float32)])[None, :])
        self._whead_all = jnp.stack(wheads)   # (G, C_max*H, C_max*O)
        self._bhead_all = jnp.stack(bheads)   # (G, 1, C_max*O)

        # jit the full batched path (kernel + static per-client slices).
        pos = tuple((self._client_pos[i][0], self._client_pos[i][1], int(p))
                    for i, p in enumerate(self.clients_message))

        def _batched(emb_all, trunk_p, whead_all, bhead_all):
            out = hyper_forward_grouped_pallas(emb_all, trunk_p,
                                               whead_all, bhead_all)
            return tuple(out[g, j, :p] for (g, j, p) in pos)

        self._batched = jax.jit(_batched)
        self._cache = None

    def forward_all(self):
        if self._cache is None:
            self._cache = self._batched(self._emb_all, self._trunk,
                                        self._whead_all, self._bhead_all)
        return self._cache

    def forward(self, idx):
        return self.forward_all()[idx]

    # pure-JAX reference (mirrors the torch forward) for correctness checking
    def forward_ref(self, idx):
        p = self.clients_message[idx]
        C_i = math.ceil(p / self.hnet_output_size)
        h = jnp.maximum(self.embeddings[idx] @ self.w1 + self.b1, 0.0)
        for w, b in self.hidden:
            h = jnp.maximum(h @ w + b, 0.0)
        fcw, fcb = self.fc[self.idx_to_fc[idx]]
        out = jnp.einsum("ck,cko->co", h, fcw[:C_i]) + fcb[:C_i]
        return out.reshape(-1)[:p]


# ----------------------------------------------------------------------------
if __name__ == "__main__":
    # chunk counts 3,4,4,4 -> C_max = 4, so C_max*E = C_max*H = 128 and
    # C_max*O = 256 (fully lane-dense blocks); 2 distinct fc groups.
    clients_message = [130, 200, 200, 250]
    embedding_dim = 32
    hnet_output_size = 64
    hidden_layers = 2
    hidm = 32

    model = HyperPallas(clients_message, embedding_dim, hnet_output_size,
                        hidden_layers, hidm, norm_var=0.002, seed=0)

    outs = jax.block_until_ready(model.forward_all())

    ok = True
    for idx in range(len(clients_message)):
        out = model.forward(idx)
        ref = model.forward_ref(idx)
        if out.shape != (clients_message[idx],):
            ok = False
        if not jnp.allclose(out, ref, atol=1e-5, rtol=1e-4):
            ok = False

    print("KERNEL_OK" if ok else "MISMATCH")
</pallas_src>

<mosaic_0001>
module attributes {stable_mosaic.version = 11 : i64} {
  func.func @kernel(%arg0: i32, %arg1: memref<1x8x128xf32, #tpu.memory_space<vmem>>, %arg2: memref<128x128xf32, #tpu.memory_space<vmem>>, %arg3: memref<1x128xf32, #tpu.memory_space<vmem>>, %arg4: memref<128x128xf32, #tpu.memory_space<vmem>>, %arg5: memref<1x128xf32, #tpu.memory_space<vmem>>, %arg6: memref<1x128x256xf32, #tpu.memory_space<vmem>>, %arg7: memref<1x1x256xf32, #tpu.memory_space<vmem>>, %arg8: memref<1x8x256xf32, #tpu.memory_space<vmem>>) attributes {dimension_semantics = [#tpu.dimension_semantics<parallel>], iteration_bounds = array<i64: 2>, scalar_prefetch = 0 : i64, scratch_operands = 0 : i64, tpu.core_type = #tpu.core_type<tc>, window_params = [{transform_indices = @transform_0, window_bounds = array<i64: 1, 8, 128>}, {pipeline_mode = #tpu.pipeline_mode<synchronous>, transform_indices = @transform_1, window_bounds = array<i64: 128, 128>}, {pipeline_mode = #tpu.pipeline_mode<synchronous>, transform_indices = @transform_2, window_bounds = array<i64: 1, 128>}, {pipeline_mode = #tpu.pipeline_mode<synchronous>, transform_indices = @transform_3, window_bounds = array<i64: 128, 128>}, {pipeline_mode = #tpu.pipeline_mode<synchronous>, transform_indices = @transform_4, window_bounds = array<i64: 1, 128>}, {transform_indices = @transform_5, window_bounds = array<i64: 1, 128, 256>}, {transform_indices = @transform_6, window_bounds = array<i64: 1, 1, 256>}, {transform_indices = @transform_7, window_bounds = array<i64: 1, 8, 256>}]} {
    %c0 = arith.constant 0 : index
    %c0_0 = arith.constant 0 : index
    %c0_1 = arith.constant 0 : index
    %0 = vector.load %arg1[%c0, %c0_0, %c0_1] : memref<1x8x128xf32, #tpu.memory_space<vmem>>, vector<1x8x128xf32>
    %1 = vector.shape_cast %0 : vector<1x8x128xf32> to vector<8x128xf32>
    %c0_2 = arith.constant 0 : index
    %c0_3 = arith.constant 0 : index
    %2 = vector.load %arg2[%c0_2, %c0_3] : memref<128x128xf32, #tpu.memory_space<vmem>>, vector<128x128xf32>
    %cst = arith.constant dense<0.000000e+00> : vector<8x128xf32>
    %3 = tpu.matmul %1, %2, %cst {dimension_numbers = #tpu.dot_dimension_numbers<[1], [0], [0], [1], [0, 0, 1, 1], [], []>} : vector<8x128xf32>, vector<128x128xf32>, vector<8x128xf32> -> vector<8x128xf32>
    %c0_4 = arith.constant 0 : index
    %c0_5 = arith.constant 0 : index
    %4 = vector.load %arg3[%c0_4, %c0_5] : memref<1x128xf32, #tpu.memory_space<vmem>>, vector<1x128xf32>
    %5 = vector.broadcast %4 : vector<1x128xf32> to vector<8x128xf32>
    %6 = arith.addf %3, %5 : vector<8x128xf32>
    %cst_6 = arith.constant 0.000000e+00 : f32
    %7 = vector.broadcast %cst_6 : f32 to vector<8x128xf32>
    %8 = arith.maximumf %6, %7 : vector<8x128xf32>
    %c0_7 = arith.constant 0 : index
    %c0_8 = arith.constant 0 : index
    %9 = vector.load %arg4[%c0_7, %c0_8] : memref<128x128xf32, #tpu.memory_space<vmem>>, vector<128x128xf32>
    %c0_9 = arith.constant 0 : index
    %c0_10 = arith.constant 0 : index
    %10 = vector.load %arg5[%c0_9, %c0_10] : memref<1x128xf32, #tpu.memory_space<vmem>>, vector<1x128xf32>
    %cst_11 = arith.constant dense<0.000000e+00> : vector<8x128xf32>
    %11 = tpu.matmul %8, %9, %cst_11 {dimension_numbers = #tpu.dot_dimension_numbers<[1], [0], [0], [1], [0, 0, 1, 1], [], []>} : vector<8x128xf32>, vector<128x128xf32>, vector<8x128xf32> -> vector<8x128xf32>
    %12 = vector.broadcast %10 : vector<1x128xf32> to vector<8x128xf32>
    %13 = arith.addf %11, %12 : vector<8x128xf32>
    %cst_12 = arith.constant 0.000000e+00 : f32
    %14 = vector.broadcast %cst_12 : f32 to vector<8x128xf32>
    %15 = arith.maximumf %13, %14 : vector<8x128xf32>
    %c0_13 = arith.constant 0 : index
    %c0_14 = arith.constant 0 : index
    %c0_15 = arith.constant 0 : index
    %16 = vector.load %arg6[%c0_13, %c0_14, %c0_15] : memref<1x128x256xf32, #tpu.memory_space<vmem>>, vector<1x128x256xf32>
    %17 = vector.shape_cast %16 : vector<1x128x256xf32> to vector<128x256xf32>
    %cst_16 = arith.constant dense<0.000000e+00> : vector<8x256xf32>
    %18 = tpu.matmul %15, %17, %cst_16 {dimension_numbers = #tpu.dot_dimension_numbers<[1], [0], [0], [1], [0, 0, 1, 1], [], []>} : vector<8x128xf32>, vector<128x256xf32>, vector<8x256xf32> -> vector<8x256xf32>
    %c0_17 = arith.constant 0 : index
    %c0_18 = arith.constant 0 : index
    %c0_19 = arith.constant 0 : index
    %19 = vector.load %arg7[%c0_17, %c0_18, %c0_19] : memref<1x1x256xf32, #tpu.memory_space<vmem>>, vector<1x1x256xf32>
    %20 = vector.shape_cast %19 : vector<1x1x256xf32> to vector<1x256xf32>
    %21 = vector.broadcast %20 : vector<1x256xf32> to vector<8x256xf32>
    %22 = arith.addf %18, %21 : vector<8x256xf32>
    %c0_20 = arith.constant 0 : index
    %c0_21 = arith.constant 0 : index
    %c0_22 = arith.constant 0 : index
    %23 = vector.load %arg8[%c0_20, %c0_21, %c0_22] : memref<1x8x256xf32, #tpu.memory_space<vmem>>, vector<1x8x256xf32>
    %24 = vector.shape_cast %23 : vector<1x8x256xf32> to vector<8x256xf32>
    %25 = vector.shape_cast %22 : vector<8x256xf32> to vector<1x8x256xf32>
    tpu.vector_store %arg8[%c0_20, %c0_21, %c0_22], %25 {strides = array<i32>} : memref<1x8x256xf32, #tpu.memory_space<vmem>>, vector<1x8x256xf32>,
    return
  }
  func.func @transform_0(%arg0: i32) -> (i32, i32, i32) {
    %c0_i32 = arith.constant 0 : i32
    %c0_i32_0 = arith.constant 0 : i32
    %c0_i32_1 = arith.constant 0 : i32
    return %arg0, %c0_i32, %c0_i32_0 : i32, i32, i32
  }
  func.func @transform_1(%arg0: i32) -> (i32, i32) {
    %c0_i32 = arith.constant 0 : i32
    %c0_i32_0 = arith.constant 0 : i32
    %c0_i32_1 = arith.constant 0 : i32
    return %c0_i32, %c0_i32_0 : i32, i32
  }
  func.func @transform_2(%arg0: i32) -> (i32, i32) {
    %c0_i32 = arith.constant 0 : i32
    %c0_i32_0 = arith.constant 0 : i32
    %c0_i32_1 = arith.constant 0 : i32
    return %c0_i32, %c0_i32_0 : i32, i32
  }
  func.func @transform_3(%arg0: i32) -> (i32, i32) {
    %c0_i32 = arith.constant 0 : i32
    %c0_i32_0 = arith.constant 0 : i32
    %c0_i32_1 = arith.constant 0 : i32
    return %c0_i32, %c0_i32_0 : i32, i32
  }
  func.func @transform_4(%arg0: i32) -> (i32, i32) {
    %c0_i32 = arith.constant 0 : i32
    %c0_i32_0 = arith.constant 0 : i32
    %c0_i32_1 = arith.constant 0 : i32
    return %c0_i32, %c0_i32_0 : i32, i32
  }
  func.func @transform_5(%arg0: i32) -> (i32, i32, i32) {
    %c0_i32 = arith.constant 0 : i32
    %c0_i32_0 = arith.constant 0 : i32
    %c0_i32_1 = arith.constant 0 : i32
    return %arg0, %c0_i32, %c0_i32_0 : i32, i32, i32
  }
  func.func @transform_6(%arg0: i32) -> (i32, i32, i32) {
    %c0_i32 = arith.constant 0 : i32
    %c0_i32_0 = arith.constant 0 : i32
    %c0_i32_1 = arith.constant 0 : i32
    return %arg0, %c0_i32, %c0_i32_0 : i32, i32, i32
  }
  func.func @transform_7(%arg0: i32) -> (i32, i32, i32) {
    %c0_i32 = arith.constant 0 : i32
    %c0_i32_0 = arith.constant 0 : i32
    %c0_i32_1 = arith.constant 0 : i32
    return %arg0, %c0_i32, %c0_i32_0 : i32, i32, i32
  }
}

</mosaic_0001>

<bundles_post_ra>
// kernel: _batched.1
= control target key start
LH: loop header
LB: loop body
LE: loop exit
PB: predicated region body
PF: predicated region fallthrough
CT: control target
= control target key end

     0   :  { %s1542_s0 = inlined_call_operand.hbm [shape: f32[2,8,128], index: 0, kind: input, shape index: {}]   ;;  %s1543_s1 = inlined_call_operand.hbm [shape: f32[128,128], index: 1, kind: input, shape index: {}]   ;;  %s1544_s2 = inlined_call_operand.vmem [shape: f32[1,128], index: 2, kind: input, shape index: {}]   ;;  %s1545_s3 = inlined_call_operand.hbm [shape: f32[128,128], index: 3, kind: input, shape index: {}]   ;;  %s1546_s4 = inlined_call_operand.hbm [shape: f32[1,128], index: 4, kind: input, shape index: {}]   ;;  %s1547_s5 = inlined_call_operand.hbm [shape: f32[2,128,256], index: 5, kind: input, shape index: {}]   ;;  %s1548_s6 = inlined_call_operand.vmem [shape: f32[2,1,256], index: 6, kind: input, shape index: {}]   ;;  %s1549_s7 = inlined_call_operand.vmem [shape: f32[2,8,256], index: 7, kind: output, shape index: {}]  }
   0x1   :  { %1558 = sst [smem:[#allocation14_spill]] %s1542_s0 }
   0x2   :  { %1559 = sst [smem:[#allocation15_spill]] %s1543_s1 }
   0x3   :  { %12 = vsyncpa [#allocation3], 0 }
   0x4   :  { %14 = vsyncpa [#allocation3 + $0x1], 0 }
   0x5   :  { %15 = vsyncpa [#allocation5], 0 }
   0x6   :  { %16 = vsyncpa [#allocation8], 0  ;;  %s1270_s24 = smov 0   ;;  %s1272_s25 = smov 0  }
   0x7   :  { %s1274_s26 = smov 0   ;;  %s1276_s27 = smov 0  }
   0x8 LB: > { %s1289_s28 = sadd.s32 4294967295, %s1217_s27   ;;  %p42_p0 = scmp.ne.s32.totalorder %s1209_s25, %s1205_s24  ;;  %s1217_s27 = sphi %s1276_s27, %s1580_s27   ;;  %s1213_s26 = sphi %s1274_s26, %s1579_s26   ;;  %s1209_s25 = sphi %s1272_s25, %s1578_s25   ;;  %s1205_s24 = sphi %s1270_s24, %s1577_s24  }
   0x9   : > { %p1551_p1 = scmp.eq.s32.totalorder %s1289_s28, 0  ;;  %p827_p2 = scmp.ge.s32.totalorder %s1217_s27, 1 }
   0xa   : > { %p215_p3 = scmp.lt.s32.totalorder %s1217_s27, 3  ;;  %s1219_s8 = smov [#allocation4]  }
   0xb   : > { %p1297_p4 = por %p1551_p1, %p42_p0  ;;  %s227_s9 = sshll.u32 %s1219_s8, 4  ;;  %s228_s9 = int_to_ptr.vmem [resolvable:$true] %s227_s9 }
   0xc   : > { %p1301_p5 = pnand %p827_p2, %p215_p3  ;;  %s1314_s11 = sadd.s32 1, %s1217_s27  }
   0xd   : > { %s1560_s29 = scalar_select %p1297_p4, 1, 0 }
   0xe   : > { %s1561_s30 = scalar_select %p1301_p5, 1, 0 }
   0xf   : > { %p972_p6 = pneg %p1301_p5  ;;  %s29_s12 = sadd.s32 1, %s1213_s26 }
  0x10   : > { %s26_s13 = ssub.s32 %s1217_s27, %s1314_s11  ;;  %s1048_s14 = scalar_lea.vmem %s228_s9, 2048 }
  0x11   : > { %p1309_p7 = pnand %p972_p6, %p1551_p1  ;;  %p1049_p9 = scmp.ne.s32.totalorder %s228_s9, %s1048_s14 }
  0x12   : > { %p1056_p12 = scmp.lt.s32.totalorder %s228_s9, %s228_s9  ;;  %p1057_p13 = scmp.lt.s32.totalorder %s1048_s14, %s1048_s14 }
  0x13   : > { %s1562_s10 = scalar_select %p1309_p7, 1, 0 }
  0x14   : > { %p1552_p8 = pneg %p1309_p7  ;;  %p1058_p0 = por %p1057_p13, %p1056_p12 }
  0x16   : > { %p1051_p10 = pnand %p1049_p9, %p1552_p8 }
  0x18   : > { %p1052_p11 = pneg %p1051_p10 }
  0x1a   : > { %p1059_p2 = pnand %p1058_p0, %p1052_p11 }
  0x1c   : > { %1062 = shalt.err (!%p1059_p2)
}
  0x1d   : > { %s1550_s15 = smov 128   ;;  %s1553_s16 = smov 8  }
  0x1e   : > { %s1563_s1 = sld [smem:[#allocation15_spill]]  ;;  %p27_p3 = scmp.eq.s32.totalorder %s26_s13, 0 }
  0x1f   : > { %p36_p6 = scmp.ne.s32.totalorder %s1213_s26, %s1209_s25  ;;  %p37_p9 = scmp.eq.s32.totalorder %s1217_s27, 0 }
  0x20   : > { %p992_p10 = scmp.lt.s32.totalorder %s1217_s27, 2  ;;  %s268_s20 = sand.u32 1, %s1217_s27  }
  0x21   : > { %s1337_s19 = scalar_select %p27_p3, %s1213_s26, %s29_s12  }
  0x22   : > { %p38_p11 = por %p37_p9, %p36_p6  ;;  %s270_s21 = sand.u32 1, %s1213_s26  }
  0x23   : > { %s832_s22 = sshll.u32 %s270_s21, 3  ;;  %s833_s23 = sshll.u32 %s1217_s27, 7 }
  0x24   : > { %975 = dma.hbm_to_vmem [thread:$0]  (!%p1309_p7), %s1563_s1, 2048, %s228_s9, [#allocation5], %s1550_s15, %s1550_s15, %s1553_s16  }
  0x25   : > { %s1564_s0 = sld [smem:[#allocation14_spill]]  ;;  %s272_s9 = scalar_lea.vmem [#allocation2], %s832_s22 }
  0x26   : > { %s279_s13 = sshll.u32 %s272_s9, 4  ;;  %p1347_p12 = pnand %p992_p10, %p38_p11  ;;  %s280_s13 = int_to_ptr.vmem [resolvable:$true] %s279_s13 }
  0x27   : > { %s834_s12 = sshll.u32 %s270_s21, 8  ;;  %s1351_s18 = scalar_lea.sflag [#allocation3], %s268_s20 }
  0x28   : > { %p1065_p0 = pneg %p1347_p12 }
  0x2b   : > { %s1345_s14 = scalar_lea.hbm %s1564_s0, %s833_s23  ;;  %s1068_s24 = scalar_lea.hbm %s1564_s0, 256 }
  0x2c   : > { %s1063_s15 = scalar_lea.hbm %s1345_s14, 128  ;;  %p1069_p6 = scmp.lt.s32.totalorder %s1345_s14, %s1564_s0 }
  0x2d   : > { %p1064_p13 = scmp.ne.s32.totalorder %s1345_s14, %s1063_s15  ;;  %p1070_p9 = scmp.lt.s32.totalorder %s1068_s24, %s1063_s15 }
  0x2f   : > { %p1066_p2 = pnand %p1065_p0, %p1064_p13  ;;  %p1071_p10 = por %p1070_p9, %p1069_p6 }
  0x31   : > { %p1067_p3 = pneg %p1066_p2 }
  0x33   : > { %p1072_p11 = pnand %p1071_p10, %p1067_p3 }
  0x35   : > { %1075 = shalt.err (!%p1072_p11)
}
  0x36   : > { %s1076_s20 = scalar_lea.vmem %s280_s13, 128  ;;  %s1222_s21 = smov [#allocation2]  }
  0x37   : > { %p1077_p1 = scmp.ne.s32.totalorder %s280_s13, %s1076_s20  ;;  %s1081_s16 = sshll.u32 %s1222_s21, 4  ;;  %s1082_s16 = int_to_ptr.vmem [resolvable:$false] %s1081_s16 }
  0x38   : > { %s1083_s22 = scalar_lea.vmem %s1082_s16, 256  ;;  %p1084_p2 = scmp.lt.s32.totalorder %s280_s13, %s1082_s16 }
  0x39   : > { %p1079_p8 = pnand %p1077_p1, %p1065_p0  ;;  %p1085_p4 = scmp.lt.s32.totalorder %s1083_s22, %s1076_s20 }
  0x3b   : > { %p1080_p13 = pneg %p1079_p8  ;;  %p1086_p5 = por %p1085_p4, %p1084_p2 }
  0x3d   : > { %p1087_p7 = pnand %p1086_p5, %p1080_p13 }
  0x3f   : > { %1090 = shalt.err (!%p1087_p7)
}
  0x40   : > { %985 = dma.hbm_to_vmem [thread:$0]  (!%p1347_p12), %s1345_s14, 128, %s280_s13, %s1351_s18  }
  0x41   : > { %s290_s15 = scalar_lea.vmem [#allocation9], %s834_s12  ;;  %s1223_s24 = smov [#allocation6]  }
  0x42   : > { %s297_s23 = sshll.u32 %s290_s15, 4  ;;  %s243_s8 = sshll.u32 %s1223_s24, 4  ;;  %s1374_s23 = int_to_ptr.vmem [resolvable:$true] %s297_s23  ;;  %s244_s8 = int_to_ptr.vmem [resolvable:$true] %s243_s8 }
  0x43   : > { %s1102_s9 = scalar_lea.vmem %s244_s8, 2048  ;;  %p1566_p8 = scmp.ne.s32.totalorder %s1562_s10, 0 }
  0x44   : > { %p1103_p1 = scmp.ne.s32.totalorder %s244_s8, %s1102_s9  ;;  %p1110_p7 = scmp.lt.s32.totalorder %s244_s8, %s244_s8 }
  0x45   : > { %p1567_p3 = pneg %p1566_p8  ;;  %p1111_p6 = scmp.lt.s32.totalorder %s1102_s9, %s1102_s9 }
  0x47   : > { %p1105_p4 = pnand %p1103_p1, %p1567_p3  ;;  %p1112_p9 = por %p1111_p6, %p1110_p7 }
  0x49   : > { %p1106_p5 = pneg %p1105_p4 }
  0x4b   : > { %p1113_p10 = pnand %p1112_p9, %p1106_p5 }
  0x4d   : > { %1116 = shalt.err (!%p1113_p10)
}
  0x4e   : > { %s1568_s16 = smov 8   ;;  %s1569_s14 = smov 128  }
  0x4f   : > { %978 = dma.hbm_to_vmem [thread:$0]  (!%p1566_p8), %s1545_s3, 2048, %s244_s8, [#allocation5], %s1569_s14, %s1569_s14, %s1568_s16  }
  0x50   : > { %s1224_s20 = smov [#allocation7]   ;;  %s850_s22 = sshll.u32 %s1217_s27, 12 }
  0x51   : > { %s257_s21 = sshll.u32 %s1224_s20, 4  ;;  %s1391_s9 = scalar_lea.hbm %s1547_s5, %s850_s22  ;;  %s258_s21 = int_to_ptr.vmem [resolvable:$true] %s257_s21 }
  0x52   : > { %s1128_s0 = scalar_lea.vmem %s258_s21, 16  ;;  %p1570_p13 = pmov %p1567_p3 }
  0x53   : > { %p1129_p11 = scmp.ne.s32.totalorder %s258_s21, %s1128_s0  ;;  %s1135_s1 = scalar_lea.vmem %s258_s21, 32 }
  0x54   : > { %p1136_p3 = scmp.lt.s32.totalorder %s258_s21, %s258_s21  ;;  %p1137_p4 = scmp.lt.s32.totalorder %s1135_s1, %s1128_s0 }
  0x55   : > { %p1131_p2 = pnand %p1129_p11, %p1570_p13 }
  0x56   : > { %p1138_p5 = por %p1137_p4, %p1136_p3 }
  0x57   : > { %p1132_p1 = pneg %p1131_p2 }
  0x59   : > { %p1139_p7 = pnand %p1138_p5, %p1132_p1 }
  0x5b   : > { %1142 = shalt.err (!%p1139_p7)
}
  0x5c   : > { %981 = dma.hbm_to_vmem [thread:$0]  (!%p1566_p8), %s1546_s4, 16, %s258_s21, [#allocation8]  }
  0x5d   : > { %s1143_s16 = scalar_lea.hbm %s1391_s9, 4096  ;;  %s1148_s14 = scalar_lea.hbm %s1547_s5, 8192 }
  0x5e   : > { %p1144_p6 = scmp.ne.s32.totalorder %s1391_s9, %s1143_s16  ;;  %p1149_p11 = scmp.lt.s32.totalorder %s1391_s9, %s1547_s5 }
  0x5f   : > { %p1150_p13 = scmp.lt.s32.totalorder %s1148_s14, %s1143_s16 }
  0x60   : > { %p1146_p9 = pnand %p1144_p6, %p1065_p0 }
  0x61   : > { %p1151_p2 = por %p1150_p13, %p1149_p11 }
  0x62   : > { %p1147_p10 = pneg %p1146_p9 }
  0x64   : > { %p1152_p1 = pnand %p1151_p2, %p1147_p10 }
  0x66   : > { %1155 = shalt.err (!%p1152_p1)
}
  0x67   : > { %s1156_s12 = scalar_lea.vmem %s1374_s23, 4096  ;;  %s1225_s20 = smov [#allocation9]  }
  0x68   : > { %p1157_p8 = scmp.ne.s32.totalorder %s1374_s23, %s1156_s12  ;;  %s1161_s21 = sshll.u32 %s1225_s20, 4  ;;  %s1162_s21 = int_to_ptr.vmem [resolvable:$false] %s1161_s21 }
  0x69   : > { %s1163_s22 = scalar_lea.vmem %s1162_s21, 8192  ;;  %p1164_p5 = scmp.lt.s32.totalorder %s1374_s23, %s1162_s21 }
  0x6a   : > { %p1159_p3 = pnand %p1157_p8, %p1065_p0  ;;  %p1165_p7 = scmp.lt.s32.totalorder %s1163_s22, %s1156_s12 }
  0x6c   : > { %p1160_p4 = pneg %p1159_p3  ;;  %p1166_p6 = por %p1165_p7, %p1164_p5 }
  0x6e   : > { %p1167_p9 = pnand %p1166_p6, %p1160_p4 }
  0x70   : > { %1170 = shalt.err (!%p1167_p9)
}
  0x71   : > { %s1226_s15 = smov 256   ;;  %s1227_s24 = smov 16  }
  0x72   : > { %988 = dma.hbm_to_vmem [thread:$0]  (!%p1347_p12), %s1391_s9, 4096, %s1374_s23, %s1351_s18, %s1226_s15, %s1226_s15, %s1227_s24  }
  0x73   : > { %p1571_p0 = scmp.ne.s32.totalorder %s1561_s30, 0 }
  0x74   : > { %s318_s27 = sand.u32 (!%p1571_p0), 1, %s1289_s28   ;;  %s320_s8 = sand.u32 (!%p1571_p0), 1, %s1209_s25  }
  0x75   : > { %316 = sbr.rel (%p1571_p0) target bundleno = 759 (0x2f7), region = 48  ;;  %s1428_s16 = sshll.u32 (!%p1571_p0), %s320_s8, 3 }
  0x76   : > { %s319_s0 = scalar_lea.sflag (!%p1571_p0), [#allocation3], %s318_s27  ;;  %s322_s1 = scalar_lea.vmem (!%p1571_p0), [#allocation2], %s1428_s16 }
  0x77   : > { %p1572_p10 = scmp.ne.s32.totalorder (!%p1571_p0), %s1560_s29, 0 }
  0x7a   : > { %1188 = dma.done.wait (%p1572_p10), %s319_s0, 128  }
  0x7b   : > { %1190 = vsyncadd (%p1572_p10), %s319_s0, 4294967168  ;;  %p1573_p12 = scmp.eq.s32.totalorder %s1289_s28, 0 }
  0x7d   : > { %1192 = dma.done.wait (%p1573_p12), [#allocation5], 4096   ;;  %p1574_p11 = pmov %p1573_p12 }
  0x7f   : > { %1194 = vsyncadd (%p1574_p11), [#allocation5], 4294963200  ;;  %p1575_p13 = pmov %p1574_p11 }
  0x80   : > { %p1576_p2 = pmov %p1574_p11 }
  0x81   : > { %1196 = dma.done.wait (%p1575_p13), [#allocation8], 16  }
  0x82   : > { %1198 = vsyncadd (%p1576_p2), [#allocation8], 4294967280  ;;  %s842_s30 = sshll.u32 %s320_s8, 8 }
  0x83   : > { %s1443_s17 = scalar_lea.vmem [#allocation9], %s842_s30 }
  0x84   : > { %1200 = dma.done.wait (%p1572_p10), %s319_s0, 4096  }
  0x85   : > { %1202 = vsyncadd (%p1572_p10), %s319_s0, 4294963200  ;;  %v1228_v0 = vmov 0.0   ;;  %vm1229_vm0 = vmmov 0   ;;  %v408_v1 = vld [vmem:[#allocation4 + $0x78] sm:$0xff]  ;;  %v407_v2 = vld [vmem:[#allocation4 + $0x70] sm:$0xff]  ;;  %p383_p1 = scmp.lt.s32.totalorder %s1289_s28, 1 }
  0x86   : > { %886 = vmatprep.subr.mxu0 %v1228_v0  ;;  %918 = vmatprep.mubr.msk.f32.mxu0 %vm1229_vm0, %v1228_v0  ;;  %v406_v3 = vld [vmem:[#allocation4 + $0x68] sm:$0xff]  ;;  %v405_v4 = vld [vmem:[#allocation4 + $0x60] sm:$0xff]  ;;  %v502_v5 = vld [vmem:[#allocation6 + $0x78] sm:$0xff] }
  0x87   : > { %921 = vmatprep.subr.mxu1 %v1228_v0  ;;  %953 = vmatprep.mubr.msk.f32.mxu1 %vm1229_vm0, %v1228_v0  ;;  %v404_v6 = vld [vmem:[#allocation4 + $0x58] sm:$0xff]  ;;  %v501_v7 = vld [vmem:[#allocation6 + $0x70] sm:$0xff]  ;;  %v500_v8 = vld [vmem:[#allocation6 + $0x68] sm:$0xff]  ;;  %s1582_s28 = smov (!%p383_p1, %s1289_s28), 1 }
  0x88   : > { %887 = vmatpush3.msra.mxu0 %v408_v1  ;;  %922 = vmatpush3.msra.mxu1 %v502_v5  ;;  %v403_v9 = vld [vmem:[#allocation4 + $0x50] sm:$0xff]  ;;  %v499_v10 = vld [vmem:[#allocation6 + $0x60] sm:$0xff]  ;;  %v402_v11 = vld [vmem:[#allocation4 + $0x48] sm:$0xff]  ;;  %s843_s23 = sshll.u32 %s1582_s28, 1  ;;  %s851_s10 = sshll.u32 %s1582_s28, 4 }
  0x89   : > { %888 = vmatprep.subr.mxu0 %v1228_v0  ;;  %923 = vmatprep.subr.mxu1 %v1228_v0  ;;  %v498_v12 = vld [vmem:[#allocation6 + $0x58] sm:$0xff]  ;;  %v401_v13 = vld [vmem:[#allocation4 + $0x40] sm:$0xff]  ;;  %v497_v14 = vld [vmem:[#allocation6 + $0x50] sm:$0xff]  ;;  %s386_s13 = scalar_lea.vmem %s1548_s6, %s843_s23  ;;  %s391_s21 = scalar_lea.vmem %s1549_s7, %s851_s10 }
  0x8a   : > { %889 = vmatpush3.msra.mxu0 %v407_v2  ;;  %924 = vmatpush3.msra.mxu1 %v501_v7  ;;  %v400_v15 = vld [vmem:[#allocation4 + $0x38] sm:$0xff]  ;;  %v496_v16 = vld [vmem:[#allocation6 + $0x48] sm:$0xff]  ;;  %v399_v17 = vld [vmem:[#allocation4 + $0x30] sm:$0xff] }
  0x8b   : > { %890 = vmatprep.subr.mxu0 %v1228_v0  ;;  %925 = vmatprep.subr.mxu1 %v1228_v0  ;;  %v495_v18 = vld [vmem:[#allocation6 + $0x40] sm:$0xff]  ;;  %v398_v19 = vld [vmem:[#allocation4 + $0x28] sm:$0xff]  ;;  %v494_v20 = vld [vmem:[#allocation6 + $0x38] sm:$0xff] }
  0x8c   : > { %891 = vmatpush3.msra.mxu0 %v406_v3  ;;  %926 = vmatpush3.msra.mxu1 %v500_v8  ;;  %v397_v21 = vld [vmem:[#allocation4 + $0x20] sm:$0xff]  ;;  %v493_v22 = vld [vmem:[#allocation6 + $0x30] sm:$0xff]  ;;  %v396_v23 = vld [vmem:[#allocation4 + $0x18] sm:$0xff] }
  0x8d   : > { %892 = vmatprep.subr.mxu0 %v1228_v0  ;;  %927 = vmatprep.subr.mxu1 %v1228_v0  ;;  %v492_v24 = vld [vmem:[#allocation6 + $0x28] sm:$0xff]  ;;  %v395_v25 = vld [vmem:[#allocation4 + $0x10] sm:$0xff]  ;;  %v491_v26 = vld [vmem:[#allocation6 + $0x20] sm:$0xff] }
  0x8e   : > { %893 = vmatpush3.msra.mxu0 %v405_v4  ;;  %928 = vmatpush3.msra.mxu1 %v499_v10  ;;  %v394_v27 = vld [vmem:[#allocation4 + $0x8] sm:$0xff]  ;;  %v490_v28 = vld [vmem:[#allocation6 + $0x18] sm:$0xff]  ;;  %v393_v29 = vld [vmem:[#allocation4] sm:$0xff] }
  0x8f   : > { %894 = vmatprep.subr.mxu0 %v1228_v0  ;;  %929 = vmatprep.subr.mxu1 %v1228_v0  ;;  %v392_v30 = vld [vmem:[%s322_s1] sm:$0xff]  ;;  %v488_v32 = vld [vmem:[#allocation6 + $0x8] sm:$0xff]  ;;  %v487_v33 = vld [vmem:[#allocation6] sm:$0xff] }
  0x90   : > { %895 = vmatpush3.msra.mxu0 %v404_v6  ;;  %930 = vmatpush3.msra.mxu1 %v498_v12  ;;  %v489_v31 = vld [vmem:[#allocation6 + $0x10] sm:$0xff]  ;;  %v612_v34 = vld [vmem:[%s1443_s17 + $0xf8] sm:$0xff]  ;;  %v609_v37 = vld [vmem:[%s1443_s17 + $0xe0] sm:$0xff]  ;;  %v615_v12 = vlaneseq }
  0x91   : > { %896 = vmatprep.subr.mxu0 %v1228_v0  ;;  %931 = vmatprep.subr.mxu1 %v1228_v0  ;;  %v611_v35 = vld [vmem:[%s1443_s17 + $0xf0] sm:$0xff]  ;;  %v610_v36 = vld [vmem:[%s1443_s17 + $0xe8] sm:$0xff]  ;;  %v608_v38 = vld [vmem:[%s1443_s17 + $0xd8] sm:$0xff] }
  0x92   : > { %897 = vmatpush3.msra.mxu0 %v403_v9  ;;  %932 = vmatpush3.msra.mxu1 %v497_v14  ;;  %v607_v39 = vld [vmem:[%s1443_s17 + $0xd0] sm:$0xff]  ;;  %v606_v40 = vld [vmem:[%s1443_s17 + $0xc8] sm:$0xff]  ;;  %v605_v41 = vld [vmem:[%s1443_s17 + $0xc0] sm:$0xff] }
  0x93   : > { %898 = vmatprep.subr.mxu0 %v1228_v0  ;;  %933 = vmatprep.subr.mxu1 %v1228_v0  ;;  %v604_v42 = vld [vmem:[%s1443_s17 + $0xb8] sm:$0xff]  ;;  %v603_v43 = vld [vmem:[%s1443_s17 + $0xb0] sm:$0xff]  ;;  %v602_v44 = vld [vmem:[%s1443_s17 + $0xa8] sm:$0xff] }
  0x94   : > { %899 = vmatpush3.msra.mxu0 %v402_v11  ;;  %934 = vmatpush3.msra.mxu1 %v496_v16  ;;  %v601_v45 = vld [vmem:[%s1443_s17 + $0xa0] sm:$0xff]  ;;  %v600_v46 = vld [vmem:[%s1443_s17 + $0x98] sm:$0xff]  ;;  %v599_v47 = vld [vmem:[%s1443_s17 + $0x90] sm:$0xff] }
  0x95   : > { %900 = vmatprep.subr.mxu0 %v1228_v0  ;;  %935 = vmatprep.subr.mxu1 %v1228_v0  ;;  %v598_v48 = vld [vmem:[%s1443_s17 + $0x88] sm:$0xff]  ;;  %v597_v49 = vld [vmem:[%s1443_s17 + $0x80] sm:$0xff]  ;;  %v596_v50 = vld [vmem:[%s1443_s17 + $0x78] sm:$0xff] }
  0x96   : > { %901 = vmatpush3.msra.mxu0 %v401_v13  ;;  %936 = vmatpush3.msra.mxu1 %v495_v18  ;;  %v595_v51 = vld [vmem:[%s1443_s17 + $0x70] sm:$0xff]  ;;  %v594_v52 = vld [vmem:[%s1443_s17 + $0x68] sm:$0xff]  ;;  %v593_v53 = vld [vmem:[%s1443_s17 + $0x60] sm:$0xff]  ;;  %v616_v13 = vshrl.u32 %v615_v12, 7 }
  0x97   : > { %902 = vmatprep.subr.mxu0 %v1228_v0  ;;  %937 = vmatprep.subr.mxu1 %v1228_v0  ;;  %v592_v54 = vld [vmem:[%s1443_s17 + $0x58] sm:$0xff]  ;;  %v591_v55 = vld [vmem:[%s1443_s17 + $0x50] sm:$0xff]  ;;  %v590_v56 = vld [vmem:[%s1443_s17 + $0x48] sm:$0xff] }
  0x98   : > { %903 = vmatpush3.msra.mxu0 %v400_v15  ;;  %938 = vmatpush3.msra.mxu1 %v494_v20  ;;  %v589_v57 = vld [vmem:[%s1443_s17 + $0x40] sm:$0xff]  ;;  %v588_v58 = vld [vmem:[%s1443_s17 + $0x38] sm:$0xff]  ;;  %v587_v59 = vld [vmem:[%s1443_s17 + $0x30] sm:$0xff]  ;;  %v617_v14 = vsub.s32 0, %v616_v13  ;;  %v621_v16 = vsub.s32 1, %v616_v13 }
  0x99   : > { %904 = vmatprep.subr.mxu0 %v1228_v0  ;;  %939 = vmatprep.subr.mxu1 %v1228_v0  ;;  %v586_v60 = vld [vmem:[%s1443_s17 + $0x28] sm:$0xff]  ;;  %v585_v2 = vld [vmem:[%s1443_s17 + $0x20] sm:$0xff]  ;;  %v584_v3 = vld [vmem:[%s1443_s17 + $0x18] sm:$0xff] }
  0x9a   : > { %905 = vmatpush3.msra.mxu0 %v399_v17  ;;  %940 = vmatpush3.msra.mxu1 %v493_v22  ;;  %v846_v61 = vld [vmem:[%s1544_s2] ss:$0 sm:$0xff]  ;;  %v583_v4 = vld [vmem:[%s1443_s17 + $0x10] sm:$0xff]  ;;  %v581_v6 = vld [vmem:[%s1443_s17] sm:$0xff] }
  0x9b   : > { %906 = vmatprep.subr.mxu0 %v1228_v0  ;;  %941 = vmatprep.subr.mxu1 %v1228_v0  ;;  %v582_v5 = vld [vmem:[%s1443_s17 + $0x8] sm:$0xff]  ;;  %v847_v7 = vld [vmem:[#allocation7] ss:$0 sm:$0xff] }
  0x9c   : > { %907 = vmatpush3.msra.mxu0 %v398_v19  ;;  %942 = vmatpush3.msra.mxu1 %v492_v24  ;;  %v613_v15 = vld [vmem:[%s386_s13] sm:$0x3] }
  0x9d   : > { %908 = vmatprep.subr.mxu0 %v1228_v0  ;;  %943 = vmatprep.subr.mxu1 %v1228_v0  ;;  %v618_v17 = vrot.slane %v613_v15, %v617_v14  ;;  %v622_v18 = vrot.slane %v613_v15, %v621_v16 }
  0x9e   : > { %909 = vmatpush3.msra.mxu0 %v397_v21  ;;  %944 = vmatpush3.msra.mxu1 %v491_v26 }
  0x9f   : > { %910 = vmatprep.subr.mxu0 %v1228_v0  ;;  %945 = vmatprep.subr.mxu1 %v1228_v0 }
  0xa0   : > { %911 = vmatpush3.msra.mxu0 %v396_v23  ;;  %946 = vmatpush3.msra.mxu1 %v490_v28 }
  0xa1   : > { %912 = vmatprep.subr.mxu0 %v1228_v0  ;;  %947 = vmatprep.subr.mxu1 %v1228_v0 }
  0xa2   : > { %913 = vmatpush3.msra.mxu0 %v395_v25  ;;  %948 = vmatpush3.msra.mxu1 %v489_v31 }
  0xa3   : > { %914 = vmatprep.subr.mxu0 %v1228_v0  ;;  %949 = vmatprep.subr.mxu1 %v1228_v0 }
  0xa4   : > { %915 = vmatpush3.msra.mxu0 %v394_v27  ;;  %950 = vmatpush3.msra.mxu1 %v488_v32 }
  0xa5   : > { %916 = vmatprep.subr.mxu0 %v1228_v0  ;;  %951 = vmatprep.subr.mxu1 %v1228_v0 }
  0xa6   : > { %917 = vmatpush3.msra.mxu0 %v393_v29  ;;  %952 = vmatpush3.msra.mxu1 %v487_v33 }
  0xa7   : > { %919 = vmatmul.mubr.f32.vlgmr.msra.gmra.mxu0 %v392_v30  ;;  %625 = vmatprep.subr.mxu0 %v612_v34 }
  0xa8   : > { %689 = vmatprep.mubr.f32.mxu0 %v1228_v0  ;;  %626 = vmatpush1.msra.mxu0 %v611_v35 }
  0xa9   : > { %627 = vmatprep.subr.mxu0 %v610_v36 }
  0xaa   : > { %628 = vmatpush1.msra.mxu0 %v609_v37 }
  0xab   : > { %629 = vmatprep.subr.mxu0 %v608_v38 }
  0xac   : > { %630 = vmatpush1.msra.mxu0 %v607_v39 }
  0xad   : > { %631 = vmatprep.subr.mxu0 %v606_v40 }
  0xae   : > { %632 = vmatpush1.msra.mxu0 %v605_v41 }
  0xaf   : > { %633 = vmatprep.subr.mxu0 %v604_v42 }
  0xb0   : > { %634 = vmatpush1.msra.mxu0 %v603_v43 }
  0xb1   : > { %635 = vmatprep.subr.mxu0 %v602_v44 }
  0xb2   : > { %636 = vmatpush1.msra.mxu0 %v601_v45 }
  0xb3   : > { %637 = vmatprep.subr.mxu0 %v600_v46 }
  0xb4   : > { %638 = vmatpush1.msra.mxu0 %v599_v47 }
  0xb5   : > { %639 = vmatprep.subr.mxu0 %v598_v48 }
  0xb6   : > { %640 = vmatpush1.msra.mxu0 %v597_v49 }
  0xb7   : > { %641 = vmatprep.subr.mxu0 %v596_v50 }
  0xb8   : > { %642 = vmatpush1.msra.mxu0 %v595_v51 }
  0xb9   : > { %643 = vmatprep.subr.mxu0 %v594_v52 }
  0xba   : > { %644 = vmatpush1.msra.mxu0 %v593_v53 }
  0xbb   : > { %645 = vmatprep.subr.mxu0 %v592_v54 }
  0xbc   : > { %646 = vmatpush1.msra.mxu0 %v591_v55 }
  0xbd   : > { %647 = vmatprep.subr.mxu0 %v590_v56 }
  0xbe   : > { %648 = vmatpush1.msra.mxu0 %v589_v57 }
  0xbf   : > { %649 = vmatprep.subr.mxu0 %v588_v58 }
  0xc0   : > { %650 = vmatpush1.msra.mxu0 %v587_v59 }
  0xc1   : > { %651 = vmatprep.subr.mxu0 %v586_v60 }
  0xc2   : > { %652 = vmatpush1.msra.mxu0 %v585_v2 }
  0xc3   : > { %653 = vmatprep.subr.mxu0 %v584_v3 }
  0xc4   : > { %654 = vmatpush1.msra.mxu0 %v583_v4 }
  0xc5   : > { %655 = vmatprep.subr.mxu0 %v582_v5 }
  0xc6   : > { %656 = vmatpush1.msra.mxu0 %v581_v6 }
 0x167   : > { %v482_v62 = vpop.f32.mrf.mxu0 }
 0x168   : > { %v483_v63 = vadd.f32 %v846_v61, %v482_v62 }
 0x169   : > { %v920_v0 = vpop.f32.mrf.mxu0 }
 0x16a   : > { %v486_v1 = vmax.f32 %v483_v63, 0.0 }
 0x16c   : > { %954 = vmatmul.mubr.f32.vlgmr.msra.gmra.mxu1 %v486_v1 }
 0x22c   : > { %v576_v8 = vpop.f32.mrf.mxu1 }
 0x22d   : > { %v577_v9 = vadd.f32 %v847_v7, %v576_v8 }
 0x22e   : > { %v955_v10 = vpop.f32.mrf.mxu1 }
 0x22f   : > { %v580_v11 = vmax.f32 %v577_v9, 0.0 }
 0x231   : > { %690 = vmatmul.mubr.f32.vlgmr.msra.gmra.mxu0 %v580_v11 }
 0x2f1   : > { %v691_v19 = vpop.f32.mrf.mxu0 }
 0x2f2   : > { %v692_v20 = vadd.f32 %v691_v19, %v618_v17 }
 0x2f3   : > { %v693_v21 = vpop.f32.mrf.mxu0 }
 0x2f4   : > { %696 = vst [vmem:[%s391_s21] sm:$0xff] %v692_v20  ;;  %v694_v22 = vadd.f32 %v693_v21, %v622_v18 }
 0x2f6   : > { %697 = vst [vmem:[%s391_s21 + $0x8] sm:$0xff] %v694_v22 }
 0x2f7 PF: > { %p19_p8 = scmp.ge.s32.totalorder %s1314_s11, 4   ;;  %s1577_s24 = smov %s1209_s25 }
 0x2f8   : > { %s1578_s25 = smov %s1213_s26  ;;  %s1579_s26 = smov %s1337_s19 }
 0x2f9   : > { %s1580_s27 = smov %s1314_s11  ;;  %21 = sbr.rel (!%p19_p8) target bundleno = 8 (0x8), region = 114 }
 0x2fe   :  { %719 = vsyncpa [#allocation3], 1 }
 0x2ff   :  { %721 = vsyncpa [#allocation3 + $0x1], 1 }
 0x300   :  { %722 = vsyncpa [#allocation5], 1 }
 0x301   :  { %723 = vsyncpa [#allocation8], 1 }

</bundles_post_ra>
